<compile_context>
chip_gen: v7x
topology: tpu7x:2x2x1
jax: 0.10.0
libtpu: 0.0.40
codegen_flags: <defaults>
</compile_context>

<pallas_src>
import functools

import numpy as np
import jax
import jax.numpy as jnp
from jax.experimental import pallas as pl
from jax.experimental.pallas import tpu as pltpu


def _round_up(x, m):
    return ((x + m - 1) // m) * m


# ---------------------------------------------------------------------------
# Init pass 1: column means  (N-tiled accumulator)
# ---------------------------------------------------------------------------
def _col_mean_kernel(x_ref, mean_ref, acc_ref, *, n_rows, tn, inv_n):
    k = pl.program_id(0)

    @pl.when(k == 0)
    def _():
        acc_ref[...] = jnp.zeros_like(acc_ref)

    x = x_ref[...].astype(jnp.float32)                      # (tn, Fp)
    row = jax.lax.broadcasted_iota(jnp.int32, x.shape, 0) + k * tn
    x = jnp.where(row < n_rows, x, 0.0)                     # mask padded rows
    acc_ref[...] += jnp.sum(x, axis=0, keepdims=True)       # (1, Fp)

    @pl.when(k == pl.num_programs(0) - 1)
    def _():
        mean_ref[...] = acc_ref[...] * inv_n


# ---------------------------------------------------------------------------
# Init pass 2: |Pearson correlation| via centered Gram  (N-tiled accumulator)
# ---------------------------------------------------------------------------
def _abs_corr_kernel(x_ref, mean_ref, corr_ref, g_ref, ss_ref, *, n_rows, tn):
    k = pl.program_id(0)

    @pl.when(k == 0)
    def _():
        g_ref[...] = jnp.zeros_like(g_ref)
        ss_ref[...] = jnp.zeros_like(ss_ref)

    x = x_ref[...].astype(jnp.float32)                      # (tn, Fp)
    row = jax.lax.broadcasted_iota(jnp.int32, x.shape, 0) + k * tn
    xc = jnp.where(row < n_rows, x - mean_ref[...], 0.0)    # centered, masked

    # f32 per-column sum of squares (accurate normalizer).
    ss_ref[...] += jnp.sum(xc * xc, axis=0, keepdims=True)  # (1, Fp)

    # bf16 MXU inputs, f32 accumulation (v6e/v7x peak; fine on v5e too).
    xcb = xc.astype(jnp.bfloat16)
    g_ref[...] += jax.lax.dot_general(
        xcb, xcb,
        dimension_numbers=(((0,), (0,)), ((), ())),         # contract samples
        preferred_element_type=jnp.float32)                 # (Fp, Fp)

    @pl.when(k == pl.num_programs(0) - 1)
    def _():
        # NOTE: zero-variance columns give |corr| = 0 here (pandas gives NaN).
        inv = jax.lax.rsqrt(ss_ref[...] + 1e-30)            # (1, Fp)
        # Row-broadcast of inv (inv_rows[i, j] = inv[i]) via rank-1 outer
        # product -- avoids a (1, Fp) -> (Fp, 1) transpose.
        inv_rows = jax.lax.dot_general(
            inv, jnp.ones_like(inv),
            dimension_numbers=(((0,), (0,)), ((), ())),
            preferred_element_type=jnp.float32)             # (Fp, Fp)
        corr_ref[...] = jnp.abs(g_ref[...] * inv * inv_rows)


def abs_corr_matrix(df_data, *, row_tile=512):
    """|corr| matrix of df_data with shape (n_samples, n_features)."""
    df_data = jnp.asarray(df_data, jnp.float32)
    n, f = df_data.shape
    fp = _round_up(f, 128)                 # lane-dense output / MXU-aligned F
    tn = min(row_tile, _round_up(n, 8))    # 512-row sample tiles (v5e-friendly)
    n_pad = _round_up(n, tn)
    ntiles = n_pad // tn
    # Zero padding is inert: padded rows are masked in-kernel, padded feature
    # columns have exactly-zero centered values -> |corr| = 0 and are sliced off.
    x = jnp.pad(df_data, ((0, n_pad - n), (0, fp - f)))
    # TODO(synk): for very wide feature tables also tile the (F_i, F_j) output
    # axes (grid=(Fi, Fj, N)) instead of holding the full (Fp, Fp) accumulator.

    itemsize = 4
    common = dict(
        compiler_params=pltpu.CompilerParams(
            dimension_semantics=("arbitrary",),       # N is a reduction axis
            vmem_limit_bytes=32 * 1024 * 1024),       # safe on v5e/v6e/v7x
    )

    mean = pl.pallas_call(
        functools.partial(_col_mean_kernel, n_rows=n, tn=tn, inv_n=1.0 / n),
        out_shape=jax.ShapeDtypeStruct((1, fp), jnp.float32),
        grid=(ntiles,),
        in_specs=[pl.BlockSpec((tn, fp), lambda i: (i, 0))],
        out_specs=pl.BlockSpec((1, fp), lambda i: (0, 0)),
        scratch_shapes=[pltpu.VMEM((1, fp), jnp.float32)],
        cost_estimate=pl.CostEstimate(
            flops=n_pad * fp, transcendentals=0,
            bytes_accessed=(n_pad * fp + fp) * itemsize),
        **common,
    )(x)

    corr_padded = pl.pallas_call(
        functools.partial(_abs_corr_kernel, n_rows=n, tn=tn),
        out_shape=jax.ShapeDtypeStruct((fp, fp), jnp.float32),
        grid=(ntiles,),
        in_specs=[pl.BlockSpec((tn, fp), lambda i: (i, 0)),
                  pl.BlockSpec((1, fp), lambda i: (0, 0))],
        out_specs=pl.BlockSpec((fp, fp), lambda i: (0, 0)),
        scratch_shapes=[pltpu.VMEM((fp, fp), jnp.float32),
                        pltpu.VMEM((1, fp), jnp.float32)],
        cost_estimate=pl.CostEstimate(
            flops=2 * n_pad * fp * fp, transcendentals=fp,
            bytes_accessed=(n_pad * fp + fp * fp + fp) * itemsize),
        **common,
    )(x, mean)

    return corr_padded[:f, :f]


# ---------------------------------------------------------------------------
# Greedy top-k correlated column selection (pandas find_k_top_corr equivalent).
# Data-dependent sort + python loop -> plain numpy at init time (glue).
# ---------------------------------------------------------------------------
def find_k_top_columns(corr_abs_np, k):
    f = corr_abs_np.shape[0]
    iu, ju = np.triu_indices(f, k=1)            # strictly-upper triangle
    vals = corr_abs_np[iu, ju]
    order = np.argsort(-vals, kind="stable")    # descending |corr|
    top = []
    for idx in order:
        i, j = int(iu[idx]), int(ju[idx])
        if i not in top and len(top) < k:
            top.append(i)
        if j not in top and len(top) < k:
            top.append(j)
        if len(top) >= k:
            break
    return top


# ---------------------------------------------------------------------------
# Forward: reduced_x = x[:, columns]   (transpose-free, B-tiled gather)
# ---------------------------------------------------------------------------
def _gather_kernel(x_ref, out_ref, *, columns):
    x = x_ref[...]                                               # (tb, F)
    in_lane = jax.lax.broadcasted_iota(jnp.int32, x.shape, 1)
    out_lane = jax.lax.broadcasted_iota(jnp.int32, out_ref.shape, 1)
    zero = jnp.zeros((), x.dtype)
    acc = jnp.zeros(out_ref.shape, x.dtype)
    # columns are trace-time Python ints -> fully static, unrolled (K small).
    for j, c in enumerate(columns):
        # Exact lane select: mask column c, cross-lane sum (one nonzero + 0s).
        col = jnp.sum(jnp.where(in_lane == c, x, zero), axis=1, keepdims=True)
        acc = jnp.where(out_lane == j, col, acc)                 # place at lane j
    out_ref[...] = acc                       # single assembled (tb, K) store


def _pick_batch_tile(b, target=512):
    if b % 8 != 0:
        return b                  # small/odd batch: full-dim block, grid=(1,)
    tb = min(target, b)
    while b % tb != 0:            # largest multiple of 8 <= target dividing B
        tb -= 8
    return tb


def dim_reduction_forward(x, columns):
    """Reproduces x[:, columns].squeeze() for 2-D x of shape (B, F)."""
    b, f = x.shape
    k = len(columns)
    tb = _pick_batch_tile(b)
    itemsize = jnp.dtype(x.dtype).itemsize
    # TODO(synk): for very wide F with tiny K, switch to a feature-resident
    # (F, B) layout with scalar-prefetched per-column DMA to cut HBM reads F/K x.
    out = pl.pallas_call(
        functools.partial(_gather_kernel,
                          columns=tuple(int(c) for c in columns)),
        out_shape=jax.ShapeDtypeStruct((b, k), x.dtype),
        grid=(b // tb,),
        in_specs=[pl.BlockSpec((tb, f), lambda i: (i, 0))],
        out_specs=pl.BlockSpec((tb, k), lambda i: (i, 0)),
        compiler_params=pltpu.CompilerParams(
            dimension_semantics=("parallel",),   # B tiles shard across TCs
            vmem_limit_bytes=32 * 1024 * 1024),
        cost_estimate=pl.CostEstimate(
            flops=2 * b * f * k, transcendentals=0,
            bytes_accessed=(b * f + b * k) * itemsize),
    )(x)
    return jnp.squeeze(out)                      # matches .squeeze()


# ---------------------------------------------------------------------------
class DimensionalityReductionPallas:
    def __init__(self, df_data, out_features=8):
        corr_abs = np.asarray(jax.device_get(abs_corr_matrix(df_data)))
        self.columns = find_k_top_columns(corr_abs, out_features)

    def __call__(self, x):
        return dim_reduction_forward(x, self.columns)


if __name__ == "__main__":
    key = jax.random.PRNGKey(0)
    k_df, k_mix, k_x = jax.random.split(key, 3)

    N_SAMPLES, N_FEATURES, OUT_FEATURES, BATCH = 64, 16, 8, 4

    # Synthetic "dataframe": correlated features (random data @ mixing matrix).
    base = jax.random.normal(k_df, (N_SAMPLES, N_FEATURES), dtype=jnp.float32)
    mix = jax.random.normal(k_mix, (N_FEATURES, N_FEATURES), dtype=jnp.float32)
    df_data = base @ (jnp.eye(N_FEATURES) + 0.5 * mix)

    module = DimensionalityReductionPallas(df_data, out_features=OUT_FEATURES)

    # Forward input (rows x features), same convention as x[:, columns].
    x = jax.random.normal(k_x, (BATCH, N_FEATURES), dtype=jnp.float32)
    out = module(x)
    out = jax.block_until_ready(out)

    # Reference check against plain-JAX gather semantics (exact data movement).
    ref = jnp.squeeze(jnp.take(x, jnp.asarray(module.columns), axis=1))
    np.testing.assert_allclose(np.asarray(out), np.asarray(ref), rtol=0, atol=0)
    assert out.shape == (BATCH, len(module.columns))
    assert len(module.columns) == OUT_FEATURES

    print("KERNEL_OK")
</pallas_src>

<mosaic_0001>
module attributes {stable_mosaic.version = 11 : i64} {
  func.func @_col_mean_kernel(%arg0: i32, %arg1: memref<64x128xf32, #tpu.memory_space<vmem>>, %arg2: memref<1x128xf32, #tpu.memory_space<vmem>>, %arg3: memref<1x128xf32, #tpu.memory_space<vmem>>) attributes {dimension_semantics = [#tpu.dimension_semantics<arbitrary>], iteration_bounds = array<i64: 1>, scalar_prefetch = 0 : i64, scratch_operands = 1 : i64, tpu.core_type = #tpu.core_type<tc>, window_params = [{transform_indices = @transform_0, window_bounds = array<i64: 64, 128>}, {pipeline_mode = #tpu.pipeline_mode<synchronous>, transform_indices = @transform_1, window_bounds = array<i64: 1, 128>}]} {
    %c0_i32 = arith.constant 0 : i32
    %0 = arith.cmpi eq, %arg0, %c0_i32 : i32
    %1 = arith.extui %0 : i1 to i32
    %c0_i32_0 = arith.constant 0 : i32
    %2 = arith.cmpi ne, %1, %c0_i32_0 : i32
    scf.if %2 {
      %cst_10 = arith.constant 0.000000e+00 : f32
      %20 = vector.broadcast %cst_10 : f32 to vector<1x128xf32>
      %c0_11 = arith.constant 0 : index
      %c0_12 = arith.constant 0 : index
      %21 = vector.load %arg3[%c0_11, %c0_12] : memref<1x128xf32, #tpu.memory_space<vmem>>, vector<1x128xf32>
      tpu.vector_store %arg3[%c0_11, %c0_12], %20 {strides = array<i32>} : memref<1x128xf32, #tpu.memory_space<vmem>>, vector<1x128xf32>,
    } else {
    }
    %c0 = arith.constant 0 : index
    %c0_1 = arith.constant 0 : index
    %3 = vector.load %arg1[%c0, %c0_1] : memref<64x128xf32, #tpu.memory_space<vmem>>, vector<64x128xf32>
    %4 = tpu.iota {dimensions = array<i32: 0>} : vector<64x128xi32>
    %c64_i32 = arith.constant 64 : i32
    %5 = arith.muli %arg0, %c64_i32 : i32
    %6 = vector.broadcast %5 : i32 to vector<64x128xi32>
    %7 = arith.addi %4, %6 : vector<64x128xi32>
    %c64_i32_2 = arith.constant 64 : i32
    %8 = vector.broadcast %c64_i32_2 : i32 to vector<64x128xi32>
    %9 = arith.cmpi slt, %7, %8 : vector<64x128xi32>
    %cst = arith.constant 0.000000e+00 : f32
    %10 = vector.broadcast %cst : f32 to vector<64x128xf32>
    %11 = arith.select %9, %3, %10 : vector<64x128xi1>, vector<64x128xf32>
    %c0_3 = arith.constant 0 : index
    %c0_4 = arith.constant 0 : index
    %12 = vector.load %arg3[%c0_3, %c0_4] : memref<1x128xf32, #tpu.memory_space<vmem>>, vector<1x128xf32>
    %cst_5 = arith.constant dense<0.000000e+00> : vector<128xf32>
    %13 = vector.multi_reduction <add>, %11, %cst_5 [0] : vector<64x128xf32> to vector<128xf32>
    %14 = vector.shape_cast %13 : vector<128xf32> to vector<1x128xf32>
    %15 = arith.addf %12, %14 : vector<1x128xf32>
    %c0_6 = arith.constant 0 : index
    %c0_7 = arith.constant 0 : index
    %16 = vector.load %arg3[%c0_6, %c0_7] : memref<1x128xf32, #tpu.memory_space<vmem>>, vector<1x128xf32>
    tpu.vector_store %arg3[%c0_6, %c0_7], %15 {strides = array<i32>} : memref<1x128xf32, #tpu.memory_space<vmem>>, vector<1x128xf32>,
    %c0_i32_8 = arith.constant 0 : i32
    %17 = arith.cmpi eq, %arg0, %c0_i32_8 : i32
    %18 = arith.extui %17 : i1 to i32
    %c0_i32_9 = arith.constant 0 : i32
    %19 = arith.cmpi ne, %18, %c0_i32_9 : i32
    scf.if %19 {
      %c0_10 = arith.constant 0 : index
      %c0_11 = arith.constant 0 : index
      %20 = vector.load %arg3[%c0_10, %c0_11] : memref<1x128xf32, #tpu.memory_space<vmem>>, vector<1x128xf32>
      %cst_12 = arith.constant 1.562500e-02 : f32
      %21 = vector.broadcast %cst_12 : f32 to vector<1x128xf32>
      %22 = arith.mulf %20, %21 : vector<1x128xf32>
      %c0_13 = arith.constant 0 : index
      %c0_14 = arith.constant 0 : index
      %23 = vector.load %arg2[%c0_13, %c0_14] : memref<1x128xf32, #tpu.memory_space<vmem>>, vector<1x128xf32>
      tpu.vector_store %arg2[%c0_13, %c0_14], %22 {strides = array<i32>} : memref<1x128xf32, #tpu.memory_space<vmem>>, vector<1x128xf32>,
    } else {
    }
    return
  }
  func.func @transform_0(%arg0: i32) -> (i32, i32) {
    %c0_i32 = arith.constant 0 : i32
    %c0_i32_0 = arith.constant 0 : i32
    return %arg0, %c0_i32 : i32, i32
  }
  func.func @transform_1(%arg0: i32) -> (i32, i32) {
    %c0_i32 = arith.constant 0 : i32
    %c0_i32_0 = arith.constant 0 : i32
    %c0_i32_1 = arith.constant 0 : i32
    return %c0_i32, %c0_i32_0 : i32, i32
  }
}

</mosaic_0001>

<bundles_post_ra>
// kernel: tpu_custom_call.1
= control target key start
LH: loop header
LB: loop body
LE: loop exit
PB: predicated region body
PF: predicated region fallthrough
CT: control target
= control target key end

     0   :  { %6 = vsyncpa [#allocation4], 0  ;;  %s200_s0 = inlined_call_operand.hbm [shape: f32[64,128], index: 0, kind: input, shape index: {}]   ;;  %s201_s1 = inlined_call_operand.hbm [shape: f32[1,128], index: 1, kind: output, shape index: {}]  }
   0x1   :  { %7 = vsyncpa [#allocation5], 0  ;;  %s161_s6 = smov [#allocation3]   ;;  %s113_s10 = scalar_lea.hbm %s200_s0, 1024 }
   0x2   :  { %s13_s7 = sshll.u32 %s161_s6, 4  ;;  %p114_p0 = scmp.ne.s32.totalorder %s200_s0, %s113_s10  ;;  %s14_s7 = int_to_ptr.vmem [resolvable:$true] %s13_s7 }
   0x3   :  { %p117_p1 = scmp.lt.u32.totalorder %s113_s10, %s200_s0 }
   0x5   :  { %p119_p2 = pnand %p117_p1, %p114_p0 }
   0x7   :  { %122 = shalt.err (!%p119_p2)
}
   0x8   :  { %s123_s15 = scalar_lea.vmem %s14_s7, 1024  ;;  %p128_p4 = scmp.lt.s32.totalorder %s14_s7, %s14_s7 }
   0x9   :  { %p124_p3 = scmp.ne.s32.totalorder %s14_s7, %s123_s15  ;;  %p129_p5 = scmp.lt.s32.totalorder %s123_s15, %s123_s15 }
   0xb   :  { %p130_p6 = por %p129_p5, %p128_p4 }
   0xd   :  { %p131_p7 = pnand %p130_p6, %p124_p3 }
   0xf   :  { %134 = shalt.err (!%p131_p7)
}
  0x10   :  { %s162_s16 = smov 128   ;;  %s163_s17 = smov 8  }
  0x11   :  { %19 = dma.hbm_to_vmem [thread:$0]  %s200_s0, 1024, %s14_s7, [#allocation4], %s162_s16, %s162_s16, %s163_s17  }
  0x12   :  { %157 = dma.done.wait [#allocation4], 1024  }
  0x13   :  { %158 = vsyncadd [#allocation4], 4294966272  ;;  %v164_v0 = vmov 0.0   ;;  %v28_v1 = vld [vmem:[#allocation3] sm:$0xff]  ;;  %v29_v2 = vld [vmem:[#allocation3 + $0x8] sm:$0xff]  ;;  %s165_s0 = smov [#allocation6]  }
  0x14   :  { %27 = vst [vmem:[#allocation2] sm:$0x1] %v164_v0  ;;  %v30_v3 = vld [vmem:[#allocation3 + $0x10] sm:$0xff]  ;;  %v72_v4 = vadd.f32 %v29_v2, %v28_v1  ;;  %v31_v5 = vld [vmem:[#allocation3 + $0x18] sm:$0xff]  ;;  %v32_v7 = vld [vmem:[#allocation3 + $0x20] sm:$0xff]  ;;  %s99_s20 = sshll.u32 %s165_s0, 4  ;;  %s100_s20 = int_to_ptr.vmem [resolvable:$true] %s99_s20 }
  0x15   :  { %v33_v9 = vld [vmem:[#allocation3 + $0x28] sm:$0xff]  ;;  %v34_v11 = vld [vmem:[#allocation3 + $0x30] sm:$0xff]  ;;  %v35_v13 = vld [vmem:[#allocation3 + $0x38] sm:$0xff]  ;;  %s135_s21 = scalar_lea.vmem %s100_s20, 16  ;;  %s139_s22 = scalar_lea.vmem %s100_s20, 32 }
  0x16   :  { %v73_v6 = vadd.f32 %v72_v4, %v30_v3  ;;  %p136_p8 = scmp.ne.s32.totalorder %s100_s20, %s135_s21  ;;  %p140_p9 = scmp.lt.s32.totalorder %s100_s20, %s100_s20 }
  0x17   :  { %p141_p10 = scmp.lt.s32.totalorder %s139_s22, %s135_s21 }
  0x18   :  { %v74_v8 = vadd.f32 %v73_v6, %v31_v5 }
  0x19   :  { %p142_p11 = por %p141_p10, %p140_p9 }
  0x1a   :  { %v75_v10 = vadd.f32 %v74_v8, %v32_v7 }
  0x1b   :  { %v71_v21 = vld [vmem:[#allocation2] sm:$0x1]  ;;  %p143_p12 = pnand %p142_p11, %p136_p8 }
  0x1c   :  { %v76_v12 = vadd.f32 %v75_v10, %v33_v9 }
  0x1e   :  { %v77_v14 = vadd.f32 %v76_v12, %v34_v11 }
  0x20   :  { %v78_v15 = vadd.f32 %v77_v14, %v35_v13 }
  0x22   :  { %v79_v16 = vrot.slane %v78_v15, 4 }
  0x24   :  { %v80_v17 = vadd.f32 %v79_v16, %v78_v15 }
  0x26   :  { %v81_v18 = vrot.slane %v80_v17, 2 }
  0x28   :  { %v82_v19 = vadd.f32 %v81_v18, %v80_v17 }
  0x2a   :  { %v83_v20 = vrot.slane %v82_v19, 1 }
  0x2c   :  { %v84_v22 = vadd.f32 %v83_v20, %v82_v19 }
  0x2e   :  { %v85_v23 = vadd.f32 %v84_v22, %v71_v21 }
  0x30   :  { %86 = vst [vmem:[#allocation2] sm:$0x1] %v85_v23 }
  0x37   :  { %v90_v24 = vld [vmem:[#allocation2] sm:$0x1] }
  0x38   :  { %v91_v25 = vmul.f32 0.015625, %v90_v24 }
  0x3a   :  { %92 = vst [vmem:[#allocation6] sm:$0x1] %v91_v25 }
  0x3b   :  { %146 = shalt.err (!%p143_p12)
}
  0x3c   :  { %s147_s25 = scalar_lea.hbm %s201_s1, 16 }
  0x3d   :  { %p148_p13 = scmp.ne.s32.totalorder %s201_s1, %s147_s25  ;;  %p151_p0 = scmp.lt.u32.totalorder %s147_s25, %s201_s1 }
  0x3f   :  { %p153_p1 = pnand %p151_p0, %p148_p13 }
  0x41   :  { %156 = shalt.err (!%p153_p1)
}
  0x42   :  { %102 = dma.vmem_to_hbm [thread:$0]  %s100_s20, 16, %s201_s1, [#allocation5]  }
  0x43   :  { %159 = dma.done.wait [#allocation5], 16  }
  0x44   :  { %160 = vsyncadd [#allocation5], 4294967280 }
  0x45   :  { %106 = vsyncpa [#allocation4], 1 }
  0x46   :  { %107 = vsyncpa [#allocation5], 1 }

</bundles_post_ra>
